<compile_context>
chip_gen: v5e
topology: v5e:2x2
jax: 0.10.0
libtpu: 0.0.40
codegen_flags: <defaults>
</compile_context>

<pallas_src>
import jax
import jax.numpy as jnp
import numpy as np
from jax.experimental import pallas as pl
from jax.experimental.pallas import tpu as pltpu


# ---------------------------------------------------------------------------
# Kernels
# ---------------------------------------------------------------------------
def _shared_a_kernel(z0_ref, zr_ref, a_ref, o_ref):
    # z0_ref : (V, B*L*O)        f32   identity hop (x.W_0) with bias folded in
    # zr_ref : (order*V, B*L*O)  cd    per-hop channel-mixed activations
    # a_ref  : (V, order*V)      cd    [A | A^2 | ...] hop operators (resident)
    # o_ref  : (V, B*L*O)              y[v, (n, l, o)]
    acc = jnp.dot(a_ref[...], zr_ref[...], preferred_element_type=jnp.float32)
    o_ref[...] = (z0_ref[...] + acc).astype(o_ref.dtype)


def _per_sample_a_kernel(z0_ref, zr_ref, a_ref, o_ref):
    # Same contraction, one sample (and its own adjacency) per grid step.
    # z0_ref: (1, V, L*O)  zr_ref: (1, order*V, L*O)  a_ref: (1, V, order*V)
    acc = jnp.dot(a_ref[0], zr_ref[0], preferred_element_type=jnp.float32)
    o_ref[0] = (z0_ref[0] + acc).astype(o_ref.dtype)


# ---------------------------------------------------------------------------
# Wrapper
# ---------------------------------------------------------------------------
def _pick_samples_per_block(N, LO, per_sample_bytes,
                            vmem_budget=8 << 20, max_bn=32):
    """Largest legal #samples per grid step (divides N, lane dim 128-aligned)."""
    legal = [bn for bn in range(1, N + 1)
             if N % bn == 0 and ((bn * LO) % 128 == 0 or bn == N)]
    fitting = [bn for bn in legal
               if bn <= max_bn and bn * per_sample_bytes <= vmem_budget]
    return max(fitting) if fitting else min(legal)


def diffusion_gcn_forward(x_nchw, A, weight, bias, *, order=2,
                          compute_dtype=jnp.bfloat16):
    """Pallas implementation of Diffusion_GCN.forward (eval mode, support_len=1).

    x_nchw : (N, C, V, L) float32
    A      : (V, V) shared or (N, V, V) per-sample adjacency ("support")
    weight : (O, (order+1)*C) 1x1-conv weight (kernel spatial dims squeezed)
    bias   : (O,)
    returns: (N, O, V, L)
    """
    N, C, V, L = x_nchw.shape
    O = weight.shape[0]
    K = order + 1
    # TODO(synk): forward() uses a single support matrix (support_len=1); the
    # support_len>1 variant would concatenate one hop stack per support here.
    assert weight.shape[1] == K * C, (weight.shape, K, C)
    LO = L * O
    out_dtype = x_nchw.dtype

    x_f32 = x_nchw.astype(jnp.float32)
    bias_f32 = bias.astype(jnp.float32)
    # Per-hop 1x1-conv weights: W_k[c, o] = weight[o, k*C + c]  (hop-major
    # channel order matches torch.cat([x, Ax, A^2x, ...], dim=1)).
    w_kco = jnp.transpose(weight.astype(jnp.float32).reshape(O, K, C), (1, 2, 0))

    if A.ndim == 2:
        # ---- shared adjacency: fold the batch into the matmul lane dim -----
        # Channel-mix first (reassociated 1x1 conv): Z[k, w, n, l, o].
        z = jnp.einsum('ncwl,kco->kwnlo', x_f32, w_kco)          # (K, V, N, L, O)
        z0 = (z[0] + bias_f32[None, None, None, :]).reshape(V, N * LO)   # f32
        zr = z[1:].reshape(order * V, N * LO).astype(compute_dtype)

        # Hop operators [A | A^2 | ... | A^order]: (V, order*V), VMEM-resident.
        a_pow = [A.astype(jnp.float32)]
        for _ in range(2, order + 1):
            a_pow.append(jnp.dot(a_pow[-1], A.astype(jnp.float32)))
        a_ops = jnp.concatenate(a_pow, axis=1).astype(compute_dtype)

        per_sample_bytes = 2 * LO * (
            V * 4
            + order * V * jnp.dtype(compute_dtype).itemsize
            + V * jnp.dtype(out_dtype).itemsize)
        bn = _pick_samples_per_block(N, LO, per_sample_bytes)
        blo = bn * LO

        out = pl.pallas_call(
            _shared_a_kernel,
            out_shape=jax.ShapeDtypeStruct((V, N * LO), out_dtype),
            grid=(N // bn,),
            in_specs=[
                pl.BlockSpec((V, blo), lambda i: (0, i)),
                pl.BlockSpec((order * V, blo), lambda i: (0, i)),
                pl.BlockSpec((V, order * V), lambda i: (0, 0)),   # resident
            ],
            out_specs=pl.BlockSpec((V, blo), lambda i: (0, i)),
            compiler_params=pltpu.CompilerParams(
                dimension_semantics=("parallel",)),
        )(z0, zr, a_ops)
        # (V, N*L*O) -> (N, O, V, L): one wrapper-side transpose (the kernel
        # itself stores lane-dense blocks, no in-kernel transpose).
        return jnp.transpose(out.reshape(V, N, L, O), (1, 3, 0, 2))

    # ---- per-sample adjacency: one sample per grid step ---------------------
    z = jnp.einsum('ncwl,kco->nkwlo', x_f32, w_kco)              # (N, K, V, L, O)
    z0 = (z[:, 0] + bias_f32[None, None, None, :]).reshape(N, V, LO)      # f32
    zr = z[:, 1:].reshape(N, order * V, LO).astype(compute_dtype)

    def _ops(a2d):
        pows = [a2d]
        for _ in range(2, order + 1):
            pows.append(jnp.dot(pows[-1], a2d))
        return jnp.concatenate(pows, axis=1)                     # (V, order*V)

    a_ops = jax.vmap(_ops)(A.astype(jnp.float32)).astype(compute_dtype)

    out = pl.pallas_call(
        _per_sample_a_kernel,
        out_shape=jax.ShapeDtypeStruct((N, V, LO), out_dtype),
        grid=(N,),
        in_specs=[
            pl.BlockSpec((1, V, LO), lambda n: (n, 0, 0)),
            pl.BlockSpec((1, order * V, LO), lambda n: (n, 0, 0)),
            pl.BlockSpec((1, V, order * V), lambda n: (n, 0, 0)),
        ],
        out_specs=pl.BlockSpec((1, V, LO), lambda n: (n, 0, 0)),
        compiler_params=pltpu.CompilerParams(
            dimension_semantics=("parallel",)),
    )(z0, zr, a_ops)
    # TODO(synk): F.dropout is implemented as identity (eval mode); PyTorch
    # training-mode RNG dropout has no bit-exact Pallas equivalent.
    return jnp.transpose(out.reshape(N, V, L, O), (0, 3, 1, 2))


# ---------------------------------------------------------------------------
# Pure-JAX reference mirroring the PyTorch forward exactly
# ---------------------------------------------------------------------------
def diffusion_gcn_reference(x, A, weight, bias, *, order=2):
    N = x.shape[0]
    if A.ndim == 2:
        A_b = jnp.broadcast_to(A[None], (N,) + A.shape)
    else:
        A_b = A
    out = [x]
    x1 = jnp.einsum("ncwl,nvw->ncvl", x, A_b)
    out.append(x1)
    for _ in range(2, order + 1):
        x2 = jnp.einsum("ncwl,nvw->ncvl", x1, A_b)
        out.append(x2)
        x1 = x2
    h = jnp.concatenate(out, axis=1)                         # (N, (order+1)*C, V, L)
    w = weight.reshape(weight.shape[0], -1)                  # (O, (order+1)*C)
    y = jnp.einsum("oc,ncvl->novl", w, h) + bias.reshape(1, -1, 1, 1)
    return y                                                 # dropout = identity (eval)


if __name__ == "__main__":
    # Small shapes consistent with the module: batch=2, c_in=4, nodes=16, time=8.
    N, C_in, V, L = 2, 4, 16, 8
    ORDER = 2
    SUPPORT_LEN = 1                      # forward uses a single adjacency matrix
    C_out = 8
    C_in_total = (ORDER * SUPPORT_LEN + 1) * C_in   # = 12

    key = jax.random.PRNGKey(0)
    kx, ka, kw, kb = jax.random.split(key, 4)

    x = jax.random.normal(kx, (N, C_in, V, L), dtype=jnp.float32)

    # Random row-normalized adjacency ("support"), 2D -> shared across batch.
    A_raw = jax.random.uniform(ka, (V, V), dtype=jnp.float32)
    A = A_raw / jnp.sum(A_raw, axis=1, keepdims=True)

    # Deterministic Conv2d(1x1) parameters (kernel spatial dims squeezed away).
    weight = 0.1 * jax.random.normal(kw, (C_out, C_in_total), dtype=jnp.float32)
    bias = 0.1 * jax.random.normal(kb, (C_out,), dtype=jnp.float32)

    y_ref = jax.block_until_ready(
        diffusion_gcn_reference(x, A, weight, bias, order=ORDER)
    )

    # Float32 path (shared 2-D adjacency).
    y_f32 = jax.block_until_ready(
        diffusion_gcn_forward(x, A, weight, bias, order=ORDER,
                              compute_dtype=jnp.float32)
    )
    assert y_f32.shape == (N, C_out, V, L), y_f32.shape
    np.testing.assert_allclose(np.asarray(y_f32), np.asarray(y_ref),
                               rtol=1e-2, atol=1e-2)

    # Default bf16 MXU path (f32 accumulation); looser tolerance for bf16.
    y_bf16 = jax.block_until_ready(
        diffusion_gcn_forward(x, A, weight, bias, order=ORDER)
    )
    np.testing.assert_allclose(np.asarray(y_bf16), np.asarray(y_ref),
                               rtol=5e-2, atol=5e-2)

    # Per-sample (3-D) adjacency path.
    A_batched = jnp.broadcast_to(A[None], (N, V, V))
    y_batched = jax.block_until_ready(
        diffusion_gcn_forward(x, A_batched, weight, bias, order=ORDER,
                              compute_dtype=jnp.float32)
    )
    np.testing.assert_allclose(np.asarray(y_batched), np.asarray(y_ref),
                               rtol=1e-2, atol=1e-2)

    print("KERNEL_OK")
</pallas_src>

<mosaic_0001>
module attributes {stable_mosaic.version = 11 : i64} {
  func.func @_shared_a_kernel(%arg0: i32, %arg1: memref<16x128xf32, #tpu.memory_space<vmem>>, %arg2: memref<32x128xf32, #tpu.memory_space<vmem>>, %arg3: memref<16x32xf32, #tpu.memory_space<vmem>>, %arg4: memref<16x128xf32, #tpu.memory_space<vmem>>) attributes {dimension_semantics = [#tpu.dimension_semantics<parallel>], iteration_bounds = array<i64: 1>, scalar_prefetch = 0 : i64, scratch_operands = 0 : i64, tpu.core_type = #tpu.core_type<tc>, window_params = [{transform_indices = @transform_0, window_bounds = array<i64: 16, 128>}, {transform_indices = @transform_1, window_bounds = array<i64: 32, 128>}, {pipeline_mode = #tpu.pipeline_mode<synchronous>, transform_indices = @transform_2, window_bounds = array<i64: 16, 32>}, {transform_indices = @transform_3, window_bounds = array<i64: 16, 128>}]} {
    %c0 = arith.constant 0 : index
    %c0_0 = arith.constant 0 : index
    %0 = vector.load %arg3[%c0, %c0_0] : memref<16x32xf32, #tpu.memory_space<vmem>>, vector<16x32xf32>
    %c0_1 = arith.constant 0 : index
    %c0_2 = arith.constant 0 : index
    %1 = vector.load %arg2[%c0_1, %c0_2] : memref<32x128xf32, #tpu.memory_space<vmem>>, vector<32x128xf32>
    %cst = arith.constant dense<0.000000e+00> : vector<16x128xf32>
    %2 = tpu.matmul %0, %1, %cst {dimension_numbers = #tpu.dot_dimension_numbers<[1], [0], [0], [1], [0, 0, 1, 1], [], []>} : vector<16x32xf32>, vector<32x128xf32>, vector<16x128xf32> -> vector<16x128xf32>
    %c0_3 = arith.constant 0 : index
    %c0_4 = arith.constant 0 : index
    %3 = vector.load %arg1[%c0_3, %c0_4] : memref<16x128xf32, #tpu.memory_space<vmem>>, vector<16x128xf32>
    %4 = arith.addf %3, %2 : vector<16x128xf32>
    %c0_5 = arith.constant 0 : index
    %c0_6 = arith.constant 0 : index
    %5 = vector.load %arg4[%c0_5, %c0_6] : memref<16x128xf32, #tpu.memory_space<vmem>>, vector<16x128xf32>
    tpu.vector_store %arg4[%c0_5, %c0_6], %4 {strides = array<i32>} : memref<16x128xf32, #tpu.memory_space<vmem>>, vector<16x128xf32>,
    return
  }
  func.func @transform_0(%arg0: i32) -> (i32, i32) {
    %c0_i32 = arith.constant 0 : i32
    %c0_i32_0 = arith.constant 0 : i32
    return %c0_i32, %arg0 : i32, i32
  }
  func.func @transform_1(%arg0: i32) -> (i32, i32) {
    %c0_i32 = arith.constant 0 : i32
    %c0_i32_0 = arith.constant 0 : i32
    return %c0_i32, %arg0 : i32, i32
  }
  func.func @transform_2(%arg0: i32) -> (i32, i32) {
    %c0_i32 = arith.constant 0 : i32
    %c0_i32_0 = arith.constant 0 : i32
    %c0_i32_1 = arith.constant 0 : i32
    return %c0_i32, %c0_i32_0 : i32, i32
  }
  func.func @transform_3(%arg0: i32) -> (i32, i32) {
    %c0_i32 = arith.constant 0 : i32
    %c0_i32_0 = arith.constant 0 : i32
    return %c0_i32, %arg0 : i32, i32
  }
}

</mosaic_0001>

<bundles_post_ra>
// kernel: tpu_custom_call.1
= control target key start
LH: loop header
LB: loop body
LE: loop exit
PB: predicated region body
PF: predicated region fallthrough
CT: control target
= control target key end

     0   :  { %8 = vsyncpa [#allocation3], 0  ;;  %s288_s0 = inlined_call_operand.hbm [shape: f32[16,128], index: 0, kind: input, shape index: {}]   ;;  %s289_s1 = inlined_call_operand.hbm [shape: f32[32,128], index: 1, kind: input, shape index: {}]   ;;  %s290_s2 = inlined_call_operand.hbm [shape: f32[16,32], index: 2, kind: input, shape index: {}]   ;;  %s291_s3 = inlined_call_operand.hbm [shape: f32[16,128], index: 3, kind: output, shape index: {}]  }
   0x1   :  { %9 = vsyncpa [#allocation6], 0 }
   0x2   :  { %10 = vsyncpa [#allocation4], 0  ;;  %s28_s14 = sshll.u32 %s289_s1, 4  ;;  %s238_s15 = smov [#allocation5]   ;;  %s29_s14 = int_to_ptr.hbm [resolvable:$true] %s28_s14 }
   0x3   :  { %s30_s16 = sshll.u32 %s238_s15, 4  ;;  %s15_s19 = sshll.u32 %s288_s0, 4  ;;  %s31_s16 = int_to_ptr.vmem [resolvable:$true] %s30_s16  ;;  %s16_s19 = int_to_ptr.hbm [resolvable:$true] %s15_s19 }
   0x4   :  { %s239_s20 = smov 128   ;;  %s240_s21 = smov 8  }
   0x5   :  { %36 = dma.hbm_to_vmem [thread:$0]  %s29_s14, 512, %s31_s16, [#allocation6], %s239_s20, %s239_s20, %s240_s21  }
   0x6   :  { %s241_s22 = smov [#allocation2]   ;;  %s41_s1 = sshll.u32 %s290_s2, 4  ;;  %s42_s1 = int_to_ptr.hbm [resolvable:$true] %s41_s1 }
   0x7   :  { %s17_s23 = sshll.u32 %s241_s22, 4  ;;  %s242_s0 = smov [#allocation7]   ;;  %s18_s23 = int_to_ptr.vmem [resolvable:$true] %s17_s23 }
   0x8   :  { %23 = dma.hbm_to_vmem [thread:$0]  %s16_s19, 256, %s18_s23, [#allocation3], %s239_s20, %s239_s20, %s240_s21  }
   0x9   :  { %s43_s26 = sshll.u32 %s242_s0, 4  ;;  %s44_s26 = int_to_ptr.vmem [resolvable:$true] %s43_s26 }
   0xa   :  { %49 = dma.hbm_to_vmem [thread:$0]  %s42_s1, 256, %s44_s26, [#allocation6], %s239_s20, %s239_s20, %s240_s21  }
   0xb   :  { %232 = dma.done.wait [#allocation3], 256  }
   0xc   :  { %233 = vsyncadd [#allocation3], 4294967040 }
   0xd   :  { %234 = dma.done.wait [#allocation6], 768  }
   0xe   :  { %235 = vsyncadd [#allocation6], 4294966528  ;;  %v67_v0 = vld [vmem:[#allocation5 + $0x18] sm:$0xff]  ;;  %v66_v1 = vld [vmem:[#allocation5 + $0x10] sm:$0xff]  ;;  %vm68_vm0 = vcmask 261120   ;;  %s243_s2 = smov [#allocation8]  }
   0xf   :  { %87 = vmatpush.msra.mxu0 %v67_v0  ;;  %126 = vmatpush.msra.mxu1 %v67_v0  ;;  %v65_v2 = vld [vmem:[#allocation5 + $0x8] sm:$0xff]  ;;  %v64_v3 = vld [vmem:[#allocation5] sm:$0xff]  ;;  %v98_v6 = vld [vmem:[#allocation2] sm:$0xff]  ;;  %s108_s27 = sshll.u32 %s243_s2, 4  ;;  %s110_s30 = sshll.u32 %s291_s3, 4  ;;  %s109_s27 = int_to_ptr.vmem [resolvable:$true] %s108_s27  ;;  %s111_s30 = int_to_ptr.hbm [resolvable:$true] %s110_s30 }
  0x10   :  { %v62_v4 = vld [vmem:[#allocation7] sm:$0xff]  ;;  %v63_v5 = vld [vmem:[#allocation7 + $0x8] sm:$0xff]  ;;  %v99_v7 = vld [vmem:[#allocation2 + $0x8] sm:$0xff] }
  0x11   :  { %88 = vmatpush.msra.mxu0 %v66_v1  ;;  %127 = vmatpush.msra.mxu1 %v66_v1 }
  0x13   :  { %89 = vmatpush.msra.mxu0 %v65_v2  ;;  %128 = vmatpush.msra.mxu1 %v65_v2 }
  0x15   :  { %90 = vmatpush.msra.mxu0 %v64_v3  ;;  %129 = vmatpush.msra.mxu1 %v64_v3 }
  0x16   :  { %124 = vmatmul.msk.f32.vlgmr.msra.gmra.mxu0 %vm68_vm0, %v62_v4  ;;  %125 = vmatmul.msk.f32.vlgmr.msra.gmra.mxu1 %vm68_vm0, %v63_v5 }
  0x93   :  { %v92_v8 = vpop.f32.mrf.mxu0  ;;  %v95_v9 = vpop.f32.mrf.mxu1 }
  0x94   :  { %v100_v10 = vadd.f32 %v98_v6, %v92_v8  ;;  %v101_v11 = vadd.f32 %v99_v7, %v95_v9 }
  0x96   :  { %102 = vst [vmem:[#allocation8] sm:$0xff] %v100_v10 }
  0x97   :  { %103 = vst [vmem:[#allocation8 + $0x8] sm:$0xff] %v101_v11 }
  0x98   :  { %116 = dma.vmem_to_hbm [thread:$0]  %s109_s27, 256, %s111_s30, [#allocation4], %s239_s20, %s239_s20, %s240_s21  }
  0x99   :  { %236 = dma.done.wait [#allocation4], 256  }
  0x9a   :  { %237 = vsyncadd [#allocation4], 4294967040 }
  0x9b   :  { %121 = vsyncpa [#allocation3], 1 }
  0x9c   :  { %122 = vsyncpa [#allocation6], 1 }
  0x9d   :  { %123 = vsyncpa [#allocation4], 1 }

</bundles_post_ra>
